<compile_context>
chip_gen: v5e
topology: v5e:2x2
jax: 0.10.0
libtpu: 0.0.40
codegen_flags: <defaults>
</compile_context>

<pallas_src>
import jax
import jax.numpy as jnp
from jax.experimental import pallas as pl
from jax.experimental.pallas import tpu as pltpu


def _round_up(n, m):
    return ((n + m - 1) // m) * m


def _vmem_limit_bytes():
    # Generation-aware scoped-VMEM budget: half of physical, clamped to
    # [32 MiB, 64 MiB]  (v5e/v6e: 64 MiB, v7x: 32 MiB).
    try:
        cap = pltpu.get_tpu_info().vmem_capacity_bytes
    except Exception:  # pragma: no cover - conservative fallback
        cap = 128 * 1024 * 1024
    return int(min(64 * 1024 * 1024, max(32 * 1024 * 1024, cap // 2)))


def _pick_tm(B, bm):
    """Largest tile-M <= bm that minimizes padding of the batch dimension."""
    if B <= bm:
        return _round_up(B, 16)          # bf16 sublane packing floor
    best_tm, best_pad = bm, _round_up(B, bm) - B
    cand = bm - 128
    while cand >= 128:
        pad = _round_up(B, cand) - B
        if pad < best_pad:
            best_tm, best_pad = cand, pad
        cand -= 128
    return best_tm


def dense_kernel(x_ref, w_ref, b_ref, o_ref, acc_ref):
    k = pl.program_id(2)

    @pl.when(k == 0)
    def _():
        # Fold the bias into accumulator init: pure broadcast, no extra add.
        acc_ref[...] = jnp.broadcast_to(
            b_ref[...].astype(jnp.float32), acc_ref.shape
        )

    # (tm, tk) bf16 x-tile  @  (tk, tn) bf16 weight-tile  ->  f32 accumulate.
    # Weight was pre-transposed in the wrapper, so this is a plain MXU feed
    # with lane-dense output; no in-kernel transpose.
    acc_ref[...] += jnp.dot(
        x_ref[...], w_ref[...], preferred_element_type=jnp.float32
    )

    @pl.when(k == pl.num_programs(2) - 1)
    def _():
        o_ref[...] = acc_ref[...].astype(o_ref.dtype)


def dense_forward(x, weight, bias, *, bm=512, bn=1024, bk=1024):
    """y = x @ weight.T + bias, tiled for the TPU MXU (bf16 operands, f32 acc)."""
    B, in_dim = x.shape
    out_dim, in_dim_w = weight.shape
    assert in_dim == in_dim_w, "weight/in_dim mismatch"
    out_dtype = x.dtype

    # ---- tile selection (respect the (8,128) layout granule) -------------
    tm = _pick_tm(B, bm)
    tn = min(bn, _round_up(out_dim, 128))
    tk = min(bk, _round_up(in_dim, 128))

    Mp = _round_up(B, tm)
    Np = _round_up(out_dim, tn)
    Kp = _round_up(in_dim, tk)

    # Megacore: make sure small problems still expose >=2 parallel blocks so
    # both TensorCores (v7x) get work.
    if (Mp // tm) * (Np // tn) == 1 and tn >= 256:
        tn = tn // 2 if (tn // 2) % 128 == 0 else 128
        Np = _round_up(out_dim, tn)

    # ---- operand prep (bf16 operands, pre-transposed weight) -------------
    xp = x.astype(jnp.bfloat16)
    if (Mp, Kp) != (B, in_dim):
        xp = jnp.pad(xp, ((0, Mp - B), (0, Kp - in_dim)))

    # One-time XLA transpose to (in_dim, out_dim): weight-stationary MXU feed.
    wp = weight.T.astype(jnp.bfloat16)
    if (Kp, Np) != (in_dim, out_dim):
        wp = jnp.pad(wp, ((0, Kp - in_dim), (0, Np - out_dim)))

    bp = bias.astype(jnp.float32).reshape(1, out_dim)
    if Np != out_dim:
        bp = jnp.pad(bp, ((0, 0), (0, Np - out_dim)))

    grid = (Mp // tm, Np // tn, Kp // tk)

    out = pl.pallas_call(
        dense_kernel,
        out_shape=jax.ShapeDtypeStruct((Mp, Np), out_dtype),
        grid_spec=pltpu.PrefetchScalarGridSpec(
            num_scalar_prefetch=0,
            grid=grid,
            in_specs=[
                pl.BlockSpec((tm, tk), lambda i, j, k: (i, k)),   # x (bf16)
                pl.BlockSpec((tk, tn), lambda i, j, k: (k, j)),   # W^T (bf16)
                pl.BlockSpec((1, tn), lambda i, j, k: (0, j)),    # bias (f32)
            ],
            out_specs=pl.BlockSpec((tm, tn), lambda i, j, k: (i, j)),
            scratch_shapes=[pltpu.VMEM((tm, tn), jnp.float32)],
        ),
        compiler_params=pltpu.CompilerParams(
            dimension_semantics=("parallel", "parallel", "arbitrary"),
            vmem_limit_bytes=_vmem_limit_bytes(),
        ),
    )(xp, wp, bp)

    if (Mp, Np) != (B, out_dim):
        out = out[:B, :out_dim]
    return out


def init_dense_params(key, input_dim, output_dim, dtype=jnp.float32):
    # Deterministic init mirroring nn.Linear defaults (uniform +/- 1/sqrt(fan_in)).
    kw, kb = jax.random.split(key)
    bound = 1.0 / (input_dim ** 0.5)
    weight = jax.random.uniform(
        kw, (output_dim, input_dim), dtype=dtype, minval=-bound, maxval=bound
    )
    bias = jax.random.uniform(
        kb, (output_dim,), dtype=dtype, minval=-bound, maxval=bound
    )
    return weight, bias


if __name__ == "__main__":
    key = jax.random.PRNGKey(0)
    k_x, k_p = jax.random.split(key)

    batch, input_dim, output_dim = 16, 128, 256
    x = jax.random.normal(k_x, (batch, input_dim), dtype=jnp.float32)
    weight, bias = init_dense_params(k_p, input_dim, output_dim)

    y = dense_forward(x, weight, bias)
    y = jax.block_until_ready(y)

    # Reference with the same bf16 operand rounding (f32 accumulation).
    x_b = x.astype(jnp.bfloat16).astype(jnp.float32)
    w_b = weight.astype(jnp.bfloat16).astype(jnp.float32)
    y_ref = x_b @ w_b.T + bias

    assert y.shape == (batch, output_dim)
    assert jnp.allclose(y, y_ref, atol=2e-3, rtol=2e-3), float(
        jnp.max(jnp.abs(y - y_ref))
    )

    print("KERNEL_OK")
</pallas_src>

<mosaic_0001>
module attributes {stable_mosaic.version = 11 : i64} {
  func.func @dense_kernel(%arg0: i32, %arg1: i32, %arg2: i32, %arg3: memref<16x128xbf16, #tpu.memory_space<vmem>>, %arg4: memref<128x128xbf16, #tpu.memory_space<vmem>>, %arg5: memref<1x128xf32, #tpu.memory_space<vmem>>, %arg6: memref<16x128xf32, #tpu.memory_space<vmem>>, %arg7: memref<16x128xf32, #tpu.memory_space<vmem>>) attributes {dimension_semantics = [#tpu.dimension_semantics<parallel>, #tpu.dimension_semantics<parallel>, #tpu.dimension_semantics<arbitrary>], iteration_bounds = array<i64: 1, 2, 1>, scalar_prefetch = 0 : i64, scratch_operands = 1 : i64, tpu.core_type = #tpu.core_type<tc>, window_params = [{transform_indices = @transform_0, window_bounds = array<i64: 16, 128>}, {transform_indices = @transform_1, window_bounds = array<i64: 128, 128>}, {transform_indices = @transform_2, window_bounds = array<i64: 1, 128>}, {transform_indices = @transform_3, window_bounds = array<i64: 16, 128>}]} {
    %c0_i32 = arith.constant 0 : i32
    %0 = arith.cmpi eq, %arg2, %c0_i32 : i32
    %1 = arith.extui %0 : i1 to i32
    %c0_i32_0 = arith.constant 0 : i32
    %2 = arith.cmpi ne, %1, %c0_i32_0 : i32
    scf.if %2 {
      %c0_10 = arith.constant 0 : index
      %c0_11 = arith.constant 0 : index
      %12 = vector.load %arg5[%c0_10, %c0_11] : memref<1x128xf32, #tpu.memory_space<vmem>>, vector<1x128xf32>
      %13 = vector.shape_cast %12 : vector<1x128xf32> to vector<1x128xf32>
      %14 = vector.broadcast %13 : vector<1x128xf32> to vector<16x128xf32>
      %c0_12 = arith.constant 0 : index
      %c0_13 = arith.constant 0 : index
      %15 = vector.load %arg7[%c0_12, %c0_13] : memref<16x128xf32, #tpu.memory_space<vmem>>, vector<16x128xf32>
      tpu.vector_store %arg7[%c0_12, %c0_13], %14 {strides = array<i32>} : memref<16x128xf32, #tpu.memory_space<vmem>>, vector<16x128xf32>,
    } else {
    }
    %c0 = arith.constant 0 : index
    %c0_1 = arith.constant 0 : index
    %3 = vector.load %arg7[%c0, %c0_1] : memref<16x128xf32, #tpu.memory_space<vmem>>, vector<16x128xf32>
    %c0_2 = arith.constant 0 : index
    %c0_3 = arith.constant 0 : index
    %4 = vector.load %arg3[%c0_2, %c0_3] : memref<16x128xbf16, #tpu.memory_space<vmem>>, vector<16x128xbf16>
    %c0_4 = arith.constant 0 : index
    %c0_5 = arith.constant 0 : index
    %5 = vector.load %arg4[%c0_4, %c0_5] : memref<128x128xbf16, #tpu.memory_space<vmem>>, vector<128x128xbf16>
    %cst = arith.constant dense<0.000000e+00> : vector<16x128xf32>
    %6 = tpu.matmul %4, %5, %cst {dimension_numbers = #tpu.dot_dimension_numbers<[1], [0], [0], [1], [0, 0, 1, 1], [], []>} : vector<16x128xbf16>, vector<128x128xbf16>, vector<16x128xf32> -> vector<16x128xf32>
    %7 = arith.addf %3, %6 : vector<16x128xf32>
    %c0_6 = arith.constant 0 : index
    %c0_7 = arith.constant 0 : index
    %8 = vector.load %arg7[%c0_6, %c0_7] : memref<16x128xf32, #tpu.memory_space<vmem>>, vector<16x128xf32>
    tpu.vector_store %arg7[%c0_6, %c0_7], %7 {strides = array<i32>} : memref<16x128xf32, #tpu.memory_space<vmem>>, vector<16x128xf32>,
    %c0_i32_8 = arith.constant 0 : i32
    %9 = arith.cmpi eq, %arg2, %c0_i32_8 : i32
    %10 = arith.extui %9 : i1 to i32
    %c0_i32_9 = arith.constant 0 : i32
    %11 = arith.cmpi ne, %10, %c0_i32_9 : i32
    scf.if %11 {
      %c0_10 = arith.constant 0 : index
      %c0_11 = arith.constant 0 : index
      %12 = vector.load %arg7[%c0_10, %c0_11] : memref<16x128xf32, #tpu.memory_space<vmem>>, vector<16x128xf32>
      %c0_12 = arith.constant 0 : index
      %c0_13 = arith.constant 0 : index
      %13 = vector.load %arg6[%c0_12, %c0_13] : memref<16x128xf32, #tpu.memory_space<vmem>>, vector<16x128xf32>
      tpu.vector_store %arg6[%c0_12, %c0_13], %12 {strides = array<i32>} : memref<16x128xf32, #tpu.memory_space<vmem>>, vector<16x128xf32>,
    } else {
    }
    return
  }
  func.func @transform_0(%arg0: i32, %arg1: i32, %arg2: i32) -> (i32, i32) {
    %c0_i32 = arith.constant 0 : i32
    return %arg0, %arg2 : i32, i32
  }
  func.func @transform_1(%arg0: i32, %arg1: i32, %arg2: i32) -> (i32, i32) {
    %c0_i32 = arith.constant 0 : i32
    return %arg2, %arg1 : i32, i32
  }
  func.func @transform_2(%arg0: i32, %arg1: i32, %arg2: i32) -> (i32, i32) {
    %c0_i32 = arith.constant 0 : i32
    %c0_i32_0 = arith.constant 0 : i32
    return %c0_i32, %arg1 : i32, i32
  }
  func.func @transform_3(%arg0: i32, %arg1: i32, %arg2: i32) -> (i32, i32) {
    %c0_i32 = arith.constant 0 : i32
    return %arg0, %arg1 : i32, i32
  }
}

</mosaic_0001>

<bundles_post_ra>
// kernel: tpu_custom_call.1
= control target key start
LH: loop header
LB: loop body
LE: loop exit
PB: predicated region body
PF: predicated region fallthrough
CT: control target
= control target key end

     0   :  { %8 = vsyncpa [#allocation4], 0  ;;  %s1053_s0 = inlined_call_operand.hbm [shape: bf16[16,128], index: 0, kind: input, shape index: {}]   ;;  %s1054_s1 = inlined_call_operand.hbm [shape: bf16[128,256], index: 1, kind: input, shape index: {}]   ;;  %s1055_s2 = inlined_call_operand.hbm [shape: f32[1,256], index: 2, kind: input, shape index: {}]   ;;  %s1056_s3 = inlined_call_operand.hbm [shape: f32[16,256], index: 3, kind: output, shape index: {}]  }
   0x1   :  { %9 = vsyncpa [#allocation7], 0 }
   0x2   :  { %11 = vsyncpa [#allocation7 + $0x1], 0 }
   0x3   :  { %12 = vsyncpa [#allocation5], 0 }
   0x4   :  { %14 = vsyncpa [#allocation5 + $0x1], 0  ;;  %s876_s12 = smov 0   ;;  %s878_s13 = smov 0  }
   0x5   :  { %s880_s14 = smov 0   ;;  %s882_s15 = smov 0  }
   0x6   :  { %s884_s16 = smov 0   ;;  %s886_s17 = smov 0  }
   0x7 LB: > { %s35_s18 = sadd.s32 1, %s843_s16  ;;  %s76_s19 = sadd.s32 1, %s835_s14  ;;  %s847_s17 = sphi %s886_s17, %s20_s17   ;;  %s843_s16 = sphi %s884_s16, %s1067_s16   ;;  %s839_s15 = sphi %s882_s15, %s1066_s15   ;;  %s835_s14 = sphi %s880_s14, %s1065_s14   ;;  %s831_s13 = sphi %s878_s13, %s1064_s13   ;;  %s827_s12 = sphi %s876_s12, %s1063_s12  }
   0x8   : > { %p37_p0 = scmp.ge.s32.totalorder %s35_s18, 2  ;;  %p83_p1 = scmp.ne.s32.totalorder %s835_s14, %s831_s13 }
   0x9   : > { %p84_p2 = scmp.eq.s32.totalorder %s847_s17, 0  ;;  %p530_p4 = scmp.ge.s32.totalorder %s847_s17, 2 }
   0xa   : > { %s1069_s18 = smov (%p37_p0, %s35_s18), 0  ;;  %p612_p6 = scmp.lt.s32.totalorder %s847_s17, 2 }
   0xb   : > { %p916_p3 = por %p84_p2, %p83_p1  ;;  %s72_s21 = ssub.s32 %s843_s16, %s1069_s18 }
   0xc   : > { %p74_p5 = scmp.eq.s32.totalorder %s72_s21, 0  ;;  %s185_s22 = sand.u32 1, %s847_s17  }
   0xd   : > { %s187_s23 = sand.u32 1, %s835_s14   ;;  %s532_s26 = sshll.u32 %s843_s16, 2 }
   0xe   : > { %s927_s24 = scalar_select %p74_p5, %s835_s14, %s76_s19  }
   0xf   : > { %s531_s25 = sshll.u32 %s187_s23, 6  ;;  %s196_s29 = scalar_lea.hbm %s1054_s1, %s532_s26 }
  0x10   : > { %s189_s30 = scalar_lea.vmem [#allocation6], %s531_s25  ;;  %s197_s5 = sshll.u32 %s196_s29, 4  ;;  %s198_s5 = int_to_ptr.hbm [resolvable:$true] %s197_s5 }
  0x11   : > { %s199_s4 = sshll.u32 %s189_s30, 4  ;;  %p937_p7 = pnand %p612_p6, %p916_p3  ;;  %s200_s4 = int_to_ptr.vmem [resolvable:$true] %s199_s4 }
  0x12   : > { %s941_s7 = scalar_lea.sflag [#allocation7], %s185_s22  ;;  %s849_s8 = smov 128  }
  0x13   : > { %s850_s9 = smov 64   ;;  %s851_s10 = smov 4  }
  0x14   : > { %603 = dma.hbm_to_vmem [thread:$0]  (!%p937_p7), %s198_s5, 1024, %s200_s4, %s941_s7, %s849_s8, %s850_s9, %s851_s10  }
  0x15   : > { %s949_s11 = sadd.s32 4294967295, %s847_s17   ;;  %s527_s19 = sadd.s32 4294967294, %s847_s17  }
  0x16   : > { %p89_p8 = scmp.ne.s32.totalorder %s831_s13, %s827_s12  ;;  %p90_p9 = scmp.eq.s32.totalorder %s949_s11, 0 }
  0x17   : > { %p141_p10 = scmp.eq.s32.totalorder %s949_s11, 1  ;;  %p147_p11 = scmp.eq.s32.totalorder %s527_s19, 1 }
  0x18   : > { %p958_p12 = por %p90_p9, %p89_p8  ;;  %p528_p13 = scmp.ge.s32.totalorder %s847_s17, 1 }
  0x19   : > { %p966_p0 = por %p141_p10, %p83_p1  ;;  %p970_p2 = por %p147_p11, %p89_p8 }
  0x1a   : > { %p154_p3 = scmp.lt.s32.totalorder %s847_s17, 3  ;;  %s169_s27 = sshll.u32 %s1053_s0, 4  ;;  %s170_s27 = int_to_ptr.hbm [resolvable:$true] %s169_s27 }
  0x1b   : > { %s852_s29 = smov [#allocation3]   ;;  %s215_s8 = scalar_lea.hbm %s1055_s2, %s843_s16 }
  0x1c   : > { %p978_p5 = pnand %p528_p13, %p154_p3  ;;  %s171_s30 = sshll.u32 %s852_s29, 4  ;;  %s172_s30 = int_to_ptr.vmem [resolvable:$true] %s171_s30 }
  0x1d   : > { %s212_s19 = scalar_lea.vmem [#allocation8], %s187_s23  ;;  %s217_s26 = sshll.u32 %s215_s8, 4  ;;  %s218_s26 = int_to_ptr.hbm [resolvable:$true] %s217_s26 }
  0x1e   : > { %p596_p1 = pneg %p978_p5  ;;  %s219_s25 = sshll.u32 %s212_s19, 4  ;;  %s220_s25 = int_to_ptr.vmem [resolvable:$true] %s219_s25 }
  0x1f   : > { %606 = dma.hbm_to_vmem [thread:$0]  (!%p937_p7), %s218_s26, 16, %s220_s25, %s941_s7  }
  0x20   : > { %p597_p6 = pnand %p596_p1, %p90_p9  ;;  %228 = sbr.rel (%p978_p5) target bundleno = 215 (0xd7), region = 32 }
  0x22   : > { %599 = dma.hbm_to_vmem [thread:$0]  (!%p597_p6), %s170_s27, 128, %s172_s30, [#allocation4], %s850_s9, %s850_s9, %s851_s10  }
  0x25   : > { %814 = dma.done.wait (%p90_p9), [#allocation4], 128  }
  0x26   : > { %816 = vsyncadd (%p90_p9), [#allocation4], 4294967168  ;;  %s235_s23 = sand.u32 1, %s949_s11   ;;  %s1006_s29 = sand.u32 1, %s831_s13  }
  0x27   : > { %s535_s4 = sshll.u32 %s1006_s29, 6  ;;  %s236_s9 = scalar_lea.sflag [#allocation7], %s235_s23 }
  0x28   : > { %s239_s6 = scalar_lea.vmem [#allocation6], %s535_s4 }
  0x29   : > { %818 = dma.done.wait (%p958_p12), %s236_s9, 1040  }
  0x2a   : > { %820 = vsyncadd (%p958_p12), %s236_s9, 4294966256  ;;  %v585_v0 = vld [vmem:[%s239_s6 + $0x38] sm:$0xff]  ;;  %v584_v1 = vld [vmem:[%s239_s6 + $0x30] sm:$0xff]  ;;  %s248_s7 = scalar_lea.vmem [#allocation8], %s1006_s29  ;;  %s536_s10 = sshll.u32 %s1006_s29, 4 }
  0x2b   : > { %363 = vmatpush.bf16.msra.mxu0 %v585_v0  ;;  %v583_v2 = vld [vmem:[%s239_s6 + $0x28] sm:$0xff]  ;;  %v582_v3 = vld [vmem:[%s239_s6 + $0x20] sm:$0xff]  ;;  %v581_v4 = vld [vmem:[%s239_s6 + $0x18] sm:$0xff]  ;;  %s574_s11 = sshll.u32 %s839_s15, 3  ;;  %s275_s30 = scalar_lea.vmem [#allocation9], %s536_s10 }
  0x2c   : > { %v580_v5 = vld [vmem:[%s239_s6 + $0x10] sm:$0xff]  ;;  %v579_v6 = vld [vmem:[%s239_s6 + $0x8] sm:$0xff]  ;;  %v578_v7 = vld [vmem:[%s239_s6] sm:$0xff]  ;;  %s402_s28 = scalar_lea.hbm %s1056_s3, %s574_s11  ;;  %s403_s5 = sshll.u32 %s275_s30, 4  ;;  %s404_s5 = int_to_ptr.vmem [resolvable:$true] %s403_s5 }
  0x2d   : > { %v577_v8 = vld [vmem:[#allocation3] sm:$0xff]  ;;  %s405_s8 = sshll.u32 %s402_s28, 4  ;;  %s389_s19 = scalar_lea.sflag [#allocation5], %s1006_s29  ;;  %s406_s8 = int_to_ptr.hbm [resolvable:$true] %s405_s8 }
  0x2e   : > { %v670_v9 = vld [vmem:[%s248_s7] ss:$0 sm:$0xff]  ;;  %s775_s25 = sshra.s32 %s406_s8, 4  ;;  %s781_s4 = scalar_lea.hbm %s1056_s3, 32  ;;  %s776_s25 = int_to_ptr.hbm [resolvable:$true] %s775_s25 }
  0x2f   : > { %364 = vmatpush.bf16.msra.mxu0 %v584_v1  ;;  %s777_s15 = scalar_lea.hbm %s776_s25, 16  ;;  %p782_p10 = scmp.lt.s32.totalorder %s776_s25, %s1056_s3 }
  0x30   : > { %p778_p7 = scmp.ne.s32.totalorder %s776_s25, %s777_s15  ;;  %p783_p11 = scmp.lt.s32.totalorder %s781_s4, %s777_s15 }
  0x32   : > { %p779_p8 = pnand %p778_p7, %p966_p0  ;;  %p784_p12 = por %p783_p11, %p782_p10 }
  0x33   : > { %365 = vmatpush.bf16.msra.mxu0 %v583_v2 }
  0x34   : > { %p780_p9 = pneg %p779_p8 }
  0x36   : > { %p785_p13 = pnand %p784_p12, %p780_p9 }
  0x37   : > { %366 = vmatpush.bf16.msra.mxu0 %v582_v3 }
  0x3b   : > { %367 = vmatpush.bf16.msra.mxu0 %v581_v4 }
  0x3f   : > { %368 = vmatpush.bf16.msra.mxu0 %v580_v5 }
  0x43   : > { %369 = vmatpush.bf16.msra.mxu0 %v579_v6 }
  0x47   : > { %370 = vmatpush.bf16.msra.mxu0 %v578_v7 }
  0x4a   : > { %371 = vmatmul.bf16.vlgmr.msra.gmra.mxu0 %v577_v8 }
  0xc7   : > { %v372_v10 = vpop.f32.mrf.mxu0 }
  0xc8   : > { %v377_v11 = vadd.f32 %v670_v9, %v372_v10 }
  0xca   : > { %386 = vst [vmem:[%s275_s30] sm:$0xff] %v377_v11 }
  0xcf   : > { %v374_v12 = vpop.f32.mrf.mxu0 }
  0xd0   : > { %v378_v13 = vadd.f32 %v670_v9, %v374_v12 }
  0xd2   : > { %387 = vst [vmem:[%s275_s30 + $0x8] sm:$0xff] %v378_v13 }
  0xd3   : > { %788 = shalt.err (!%p785_p13)
}
  0xd4   : > { %s853_s29 = smov 128   ;;  %s854_s7 = smov 256  }
  0xd5   : > { %s855_s10 = smov 8  }
  0xd6   : > { %594 = dma.vmem_to_hbm [thread:$0]  (%p966_p0), %s404_s5, 256, %s406_s8, %s389_s19, %s853_s29, %s854_s7, %s855_s10  }
  0xd7 PF: > { %s420_s11 = sand.u32 1, %s827_s12   ;;  %p608_p3 = pnand %p530_p4, %p970_p2 }
  0xd8   : > { %s421_s20 = scalar_lea.sflag [#allocation5], %s420_s11 }
  0xd9   : > { %p609_p5 = pneg %p608_p3 }
  0xdb   : > { %822 = dma.done.wait (%p609_p5), %s421_s20, 256  }
  0xdc   : > { %824 = vsyncadd (%p609_p5), %s421_s20, 4294967040  ;;  %s20_s17 = sadd.s32 1, %s847_s17   ;;  %s1063_s12 = smov %s831_s13 }
  0xdd   : > { %p17_p1 = scmp.ge.s32.totalorder %s20_s17, 4   ;;  %s1064_s13 = smov %s835_s14 }
  0xde   : > { %s1065_s14 = smov %s927_s24  ;;  %s1066_s15 = smov %s843_s16 }
  0xdf   : > { %s1067_s16 = smov %s1069_s18  ;;  %19 = sbr.rel (!%p17_p1) target bundleno = 7 (0x7), region = 102 }
  0xe4   :  { %427 = vsyncpa [#allocation4], 1 }
  0xe5   :  { %429 = vsyncpa [#allocation4 + $0x1], 1 }
  0xe6   :  { %430 = vsyncpa [#allocation7], 1 }
  0xe7   :  { %432 = vsyncpa [#allocation7 + $0x1], 1 }
  0xe8   :  { %433 = vsyncpa [#allocation5], 1 }
  0xe9   :  { %435 = vsyncpa [#allocation5 + $0x1], 1 }

</bundles_post_ra>
